<compile_context>
chip_gen: v7x
topology: tpu7x:2x2x1
jax: 0.10.0
libtpu: 0.0.40
codegen_flags: <defaults>
</compile_context>

<pallas_src>
import jax
import jax.numpy as jnp
from jax.experimental import pallas as pl
from jax.experimental.pallas import tpu as pltpu


def _l1_norm_kernel(x_ref, o_ref):
    x = x_ref[...]                                            # (tile_n, D)
    xf = x.astype(jnp.float32)
    s = jnp.sum(jnp.abs(xf), axis=-1, keepdims=True)          # lane reduce (XLU)
    # EUP approximate reciprocal (otherwise-idle slot) + one Newton-Raphson
    # refinement on the tiny (tile_n, 1) vector to recover full f32 accuracy.
    r = pl.reciprocal(s, approx=True)
    r = r * (2.0 - s * r)
    o_ref[...] = (xf * r).astype(o_ref.dtype)


def _round_up(v: int, m: int) -> int:
    return ((v + m - 1) // m) * m


def _pick_tile_n(N: int, D: int, itemsize: int,
                 *, target_block_bytes: int = 2 << 20,
                 max_block_bytes: int = 4 << 20) -> int:
    """Pick a row-tile: big enough to amortize per-step overhead (~0.35us),
    small enough that 2 (double-buffer) x 2 (in+out) blocks fit VMEM on all
    generations (v5e/v6e 128 MiB, v7x 64 MiB)."""
    row_bytes = max(1, D * itemsize)
    tile_n = max(8, (target_block_bytes // row_bytes) // 8 * 8)
    cap = max(8, (max_block_bytes // row_bytes) // 8 * 8)
    tile_n = min(tile_n, cap)
    # No point in a tile taller than the (8-padded) row count.
    tile_n = min(tile_n, _round_up(N, 8))
    # Keep >= 2 grid steps when possible so the "parallel" row axis can be
    # sharded across v7x's two TensorCores.
    if N > 8 and pl.cdiv(N, tile_n) < 2:
        tile_n = max(8, _round_up(pl.cdiv(N, 2), 8))
    return tile_n


def l1_normalize(x: jax.Array) -> jax.Array:
    """L1-normalize each row of a (N, D) array."""
    N, D = x.shape
    tile_n = _pick_tile_n(N, D, x.dtype.itemsize)
    n_tiles = pl.cdiv(N, tile_n)
    # TODO(synk): if D is ever so large that even an 8-row block overflows
    # VMEM, add a second 'arbitrary' grid axis over D with a two-phase
    # (sum pass + finalize-under-pl.when) reduction.
    block_bytes = tile_n * D * x.dtype.itemsize
    # Double-buffered input + output blocks, plus headroom.
    vmem_limit = max(16 << 20, min(32 << 20, 4 * block_bytes + (4 << 20)))
    return pl.pallas_call(
        _l1_norm_kernel,
        out_shape=jax.ShapeDtypeStruct((N, D), x.dtype),
        grid_spec=pltpu.PrefetchScalarGridSpec(
            num_scalar_prefetch=0,
            grid=(n_tiles,),
            in_specs=[pl.BlockSpec((tile_n, D), lambda i: (i, 0))],
            out_specs=pl.BlockSpec((tile_n, D), lambda i: (i, 0)),
        ),
        compiler_params=pltpu.CompilerParams(
            dimension_semantics=("parallel",),
            vmem_limit_bytes=vmem_limit,
        ),
    )(x)


if __name__ == "__main__":
    key = jax.random.PRNGKey(0)

    # Small deterministic checks, including a shape where N is NOT a multiple
    # of the chosen tile (exercises the partial-block / masked-tail path).
    shapes = [(16, 256), (20, 384)]
    for i, (N, D) in enumerate(shapes):
        k = jax.random.fold_in(key, i)
        x = jax.random.normal(k, (N, D), dtype=jnp.float32)

        out = jax.block_until_ready(l1_normalize(x))

        # Reference (plain JAX), matching the CUDA kernel semantics:
        # divide by the sum of absolute values per row (no eps).
        ref = x / jnp.sum(jnp.abs(x), axis=1, keepdims=True)
        assert out.shape == ref.shape, f"shape mismatch for {(N, D)}"
        assert jnp.allclose(out, ref, rtol=1e-5, atol=1e-6), \
            f"mismatch vs reference for shape {(N, D)}"

    print("KERNEL_OK")
</pallas_src>

<mosaic_0001>
module attributes {stable_mosaic.version = 11 : i64} {
  func.func @_l1_norm_kernel(%arg0: i32, %arg1: memref<8x256xf32, #tpu.memory_space<vmem>>, %arg2: memref<8x256xf32, #tpu.memory_space<vmem>>) attributes {dimension_semantics = [#tpu.dimension_semantics<parallel>], iteration_bounds = array<i64: 2>, scalar_prefetch = 0 : i64, scratch_operands = 0 : i64, tpu.core_type = #tpu.core_type<tc>, window_params = [{transform_indices = @transform_0, window_bounds = array<i64: 8, 256>}, {transform_indices = @transform_1, window_bounds = array<i64: 8, 256>}]} {
    %c0 = arith.constant 0 : index
    %c0_0 = arith.constant 0 : index
    %0 = vector.load %arg1[%c0, %c0_0] : memref<8x256xf32, #tpu.memory_space<vmem>>, vector<8x256xf32>
    %1 = math.absf %0 : vector<8x256xf32>
    %cst = arith.constant dense<0.000000e+00> : vector<8xf32>
    %2 = vector.multi_reduction <add>, %1, %cst [1] : vector<8x256xf32> to vector<8xf32>
    %3 = vector.shape_cast %2 : vector<8xf32> to vector<8x1xf32>
    %4 = tpu.reciprocal %3 {approx = true} : vector<8x1xf32> -> vector<8x1xf32>
    %5 = arith.mulf %3, %4 : vector<8x1xf32>
    %cst_1 = arith.constant 2.000000e+00 : f32
    %6 = vector.broadcast %cst_1 : f32 to vector<8x1xf32>
    %7 = arith.subf %6, %5 : vector<8x1xf32>
    %8 = arith.mulf %4, %7 : vector<8x1xf32>
    %9 = vector.broadcast %8 : vector<8x1xf32> to vector<8x256xf32>
    %10 = arith.mulf %0, %9 : vector<8x256xf32>
    %c0_2 = arith.constant 0 : index
    %c0_3 = arith.constant 0 : index
    %11 = vector.load %arg2[%c0_2, %c0_3] : memref<8x256xf32, #tpu.memory_space<vmem>>, vector<8x256xf32>
    tpu.vector_store %arg2[%c0_2, %c0_3], %10 {strides = array<i32>} : memref<8x256xf32, #tpu.memory_space<vmem>>, vector<8x256xf32>,
    return
  }
  func.func @transform_0(%arg0: i32) -> (i32, i32) {
    %c0_i32 = arith.constant 0 : i32
    %c0_i32_0 = arith.constant 0 : i32
    return %arg0, %c0_i32 : i32, i32
  }
  func.func @transform_1(%arg0: i32) -> (i32, i32) {
    %c0_i32 = arith.constant 0 : i32
    %c0_i32_0 = arith.constant 0 : i32
    return %arg0, %c0_i32 : i32, i32
  }
}

</mosaic_0001>

<bundles_post_ra>
// kernel: tpu_custom_call.1
= control target key start
LH: loop header
LB: loop body
LE: loop exit
PB: predicated region body
PF: predicated region fallthrough
CT: control target
= control target key end

     0   :  { %6 = vsyncpa [#allocation3], 0  ;;  %s568_s0 = inlined_call_operand.hbm [shape: f32[16,256], index: 0, kind: input, shape index: {}]   ;;  %s569_s1 = inlined_call_operand.hbm [shape: f32[16,256], index: 1, kind: output, shape index: {}]  }
   0x1   :  { %8 = vsyncpa [#allocation3 + $0x1], 0 }
   0x2   :  { %9 = vsyncpa [#allocation4], 0 }
   0x3   :  { %11 = vsyncpa [#allocation4 + $0x1], 0  ;;  %s407_s6 = smov 0   ;;  %s409_s7 = smov 0  }
   0x4   :  { %s411_s8 = smov 0   ;;  %s413_s9 = smov 0  }
   0x5 LB: > { %s428_s10 = sadd.s32 4294967295, %s393_s9   ;;  %s233_s11 = sadd.s32 4294967294, %s393_s9   ;;  %s393_s9 = sphi %s413_s9, %s584_s9   ;;  %s389_s8 = sphi %s411_s8, %s583_s8   ;;  %s385_s7 = sphi %s409_s7, %s582_s7   ;;  %s381_s6 = sphi %s407_s6, %s581_s6  }
   0x6   : > { %s432_s12 = sadd.s32 1, %s393_s9   ;;  %s24_s13 = sadd.s32 1, %s389_s8 }
   0x7   : > { %s21_s14 = ssub.s32 %s393_s9, %s432_s12  ;;  %p31_p0 = scmp.ne.s32.totalorder %s389_s8, %s385_s7 }
   0x8   : > { %p22_p1 = scmp.eq.s32.totalorder %s21_s14, 0  ;;  %p32_p2 = scmp.eq.s32.totalorder %s393_s9, 0 }
   0x9   : > { %p37_p3 = scmp.ne.s32.totalorder %s385_s7, %s381_s6  ;;  %p38_p4 = scmp.eq.s32.totalorder %s428_s10, 0 }
   0xa   : > { %s444_s15 = scalar_select %p22_p1, %s389_s8, %s24_s13  }
   0xb   : > { %p446_p5 = por %p32_p2, %p31_p0  ;;  %p450_p6 = por %p38_p4, %p37_p3 }
   0xc   : > { %p61_p7 = scmp.eq.s32.totalorder %s428_s10, 1  ;;  %p67_p8 = scmp.eq.s32.totalorder %s233_s11, 1 }
   0xd   : > { %p261_p10 = scmp.lt.s32.totalorder %s393_s9, 2  ;;  %s87_s20 = sand.u32 1, %s389_s8  }
   0xe   : > { %p457_p11 = por %p61_p7, %p31_p0  ;;  %p461_p12 = por %p67_p8, %p37_p3 }
   0xf   : > { %s247_s21 = sshll.u32 %s393_s9, 8  ;;  %s236_s22 = sshll.u32 %s87_s20, 4 }
  0x10   : > { %s573_s18 = scalar_select %p457_p11, 1, 0 }
  0x11   : > { %s574_s19 = scalar_select %p461_p12, 1, 0 }
  0x12   : > { %s470_s25 = scalar_lea.hbm %s568_s0, %s247_s21  ;;  %s91_s26 = scalar_lea.vmem [#allocation2], %s236_s22 }
  0x13   : > { %s99_s27 = sshll.u32 %s91_s26, 4  ;;  %p474_p13 = pnand %p261_p10, %p446_p5  ;;  %s478_s27 = int_to_ptr.vmem [resolvable:$true] %s99_s27 }
  0x14   : > { %s88_s29 = scalar_lea.sflag [#allocation3], %s87_s20  ;;  %s297_s30 = scalar_lea.hbm %s470_s25, 256 }
  0x15   : > { %p298_p2 = scmp.ne.s32.totalorder %s470_s25, %s297_s30  ;;  %p299_p3 = pneg %p474_p13 }
  0x16   : > { %s302_s4 = scalar_lea.hbm %s568_s0, 512  ;;  %p303_p5 = scmp.lt.u32.totalorder %s470_s25, %s568_s0 }
  0x17   : > { %p300_p4 = pnand %p299_p3, %p298_p2  ;;  %p304_p8 = scmp.lt.u32.totalorder %s302_s4, %s297_s30 }
  0x18   : > { %p306_p9 = scmp.lt.u32.totalorder %s297_s30, %s470_s25 }
  0x19   : > { %p301_p7 = pneg %p300_p4  ;;  %p305_p10 = por %p304_p8, %p303_p5 }
  0x1b   : > { %p307_p0 = por %p306_p9, %p305_p10 }
  0x1d   : > { %p308_p1 = pnand %p307_p0, %p301_p7 }
  0x1f   : > { %311 = shalt.err (!%p308_p1)
}
  0x20   : > { %s312_s13 = scalar_lea.vmem %s478_s27, 256  ;;  %s395_s14 = smov [#allocation2]  }
  0x21   : > { %p313_p2 = scmp.ne.s32.totalorder %s478_s27, %s312_s13  ;;  %s317_s16 = sshll.u32 %s395_s14, 4  ;;  %s318_s16 = int_to_ptr.vmem [resolvable:$false] %s317_s16 }
  0x22   : > { %s319_s20 = scalar_lea.vmem %s318_s16, 512  ;;  %p320_p11 = scmp.lt.s32.totalorder %s478_s27, %s318_s16 }
  0x23   : > { %p315_p4 = pnand %p313_p2, %p299_p3  ;;  %p321_p5 = scmp.lt.s32.totalorder %s319_s20, %s312_s13 }
  0x25   : > { %p316_p12 = pneg %p315_p4  ;;  %p322_p8 = por %p321_p5, %p320_p11 }
  0x27   : > { %p323_p9 = pnand %p322_p8, %p316_p12 }
  0x29   : > { %326 = shalt.err (!%p323_p9)
}
  0x2a   : > { %256 = dma.hbm_to_vmem [thread:$0]  (!%p474_p13), %s470_s25, 256, %s478_s27, %s88_s29  }
  0x2b   : > { %p576_p0 = scmp.lt.s32.totalorder %s393_s9, 3  ;;  %p577_p1 = scmp.ge.s32.totalorder %s393_s9, 1 }
  0x2d   : > { %p105_p3 = pnand %p577_p1, %p576_p0 }
  0x2e   : > { %s512_s21 = sand.u32 (!%p105_p3), 1, %s385_s7  }
  0x2f   : > { %108 = sbr.rel (%p105_p3) target bundleno = 235 (0xeb), region = 24  ;;  %s240_s22 = sshll.u32 (!%p105_p3), %s512_s21, 4 }
  0x30   : > { %s111_s23 = scalar_lea.sflag (!%p105_p3), [#allocation3], %s512_s21  ;;  %s114_s24 = scalar_lea.vmem (!%p105_p3), [#allocation2], %s240_s22 }
  0x36   : > { %372 = dma.done.wait (%p450_p6), %s111_s23, 256  }
  0x37   : > { %374 = vsyncadd (%p450_p6), %s111_s23, 4294967040  ;;  %v133_v0 = vld [vmem:[%s114_s24] sm:$0xff]  ;;  %v134_v1 = vld [vmem:[%s114_s24 + $0x8] sm:$0xff]  ;;  %s248_s25 = sshll.u32 %s428_s10, 8  ;;  %s132_s26 = scalar_lea.vmem [#allocation5], %s240_s22 }
  0x38   : > { %v135_v2 = vand.u32 2147483647, %v133_v0  ;;  %v136_v3 = vand.u32 2147483647, %v134_v1  ;;  %s163_s27 = sshll.u32 %s132_s26, 4  ;;  %s524_s29 = scalar_lea.hbm %s569_s1, %s248_s25  ;;  %s526_s27 = int_to_ptr.vmem [resolvable:$true] %s163_s27 }
  0x39   : > { %s149_s30 = scalar_lea.sflag [#allocation4], %s512_s21  ;;  %s327_s2 = scalar_lea.vmem %s526_s27, 256 }
  0x3a   : > { %v137_v4 = vadd.f32 %v136_v3, %v135_v2  ;;  %p328_p6 = scmp.ne.s32.totalorder %s526_s27, %s327_s2  ;;  %p578_p11 = scmp.ne.s32.totalorder %s573_s18, 0 }
  0x3b   : > { %s396_s10 = smov [#allocation5]  }
  0x3c   : > { %138 = vadd.xlane.f32.xlu0 %v137_v4  ;;  %p329_p12 = pnand %p328_p6, %p578_p11  ;;  %s331_s3 = sshll.u32 %s396_s10, 4  ;;  %s332_s3 = int_to_ptr.vmem [resolvable:$false] %s331_s3 }
  0x3d   : > { %s333_s4 = scalar_lea.vmem %s332_s3, 512  ;;  %p334_p7 = scmp.lt.s32.totalorder %s526_s27, %s332_s3 }
  0x3e   : > { %p330_p13 = pneg %p329_p12  ;;  %p335_p10 = scmp.lt.s32.totalorder %s333_s4, %s327_s2 }
  0x40   : > { %p336_p2 = por %p335_p10, %p334_p7 }
  0x42   : > { %p337_p4 = pnand %p336_p2, %p330_p13 }
  0xc9   : > { %v139_v5 = vpop.xlane.xlu0 %138 }
  0xca   : > { %295 = vrcp.f32 %v139_v5 }
  0xd4   : > { %v296_v6 = vpop.eup %295 }
  0xd5   : > { %v141_v7 = vmul.f32 %v296_v6, %v139_v5 }
  0xd7   : > { %v142_v8 = vsub.f32 2.0, %v141_v7 }
  0xd9   : > { %v143_v9 = vmul.f32 %v296_v6, %v142_v8 }
  0xdb   : > { %v144_v10 = vmul.f32 %v143_v9, %v133_v0  ;;  %v145_v11 = vmul.f32 %v143_v9, %v134_v1 }
  0xdd   : > { %146 = vst [vmem:[%s132_s26] sm:$0xff] %v144_v10  ;;  %147 = vst [vmem:[%s132_s26 + $0x8] sm:$0xff] %v145_v11 }
  0xde   : > { %340 = shalt.err (!%p337_p4)
}
  0xdf   : > { %s341_s5 = scalar_lea.hbm %s524_s29, 256  ;;  %s345_s14 = scalar_lea.hbm %s569_s1, 512 }
  0xe0   : > { %p342_p5 = scmp.ne.s32.totalorder %s524_s29, %s341_s5  ;;  %p346_p0 = scmp.lt.u32.totalorder %s524_s29, %s569_s1 }
  0xe1   : > { %p347_p1 = scmp.lt.u32.totalorder %s345_s14, %s341_s5  ;;  %p349_p6 = scmp.lt.u32.totalorder %s341_s5, %s524_s29 }
  0xe2   : > { %p343_p8 = pnand %p342_p5, %p578_p11 }
  0xe3   : > { %p348_p3 = por %p347_p1, %p346_p0 }
  0xe4   : > { %p344_p9 = pneg %p343_p8 }
  0xe5   : > { %p350_p12 = por %p349_p6, %p348_p3 }
  0xe7   : > { %p351_p13 = pnand %p350_p12, %p344_p9 }
  0xe9   : > { %354 = shalt.err (!%p351_p13)
}
  0xea   : > { %251 = dma.vmem_to_hbm [thread:$0]  (%p578_p11), %s526_s27, 256, %s524_s29, %s149_s30  }
  0xeb PF: > { %s175_s21 = sand.u32 1, %s381_s6   ;;  %p579_p7 = scmp.ne.s32.totalorder %s574_s19, 0 }
  0xec   : > { %p580_p10 = scmp.ge.s32.totalorder %s393_s9, 2  ;;  %s176_s22 = scalar_lea.sflag [#allocation4], %s175_s21 }
  0xee   : > { %p258_p2 = pnand %p580_p10, %p579_p7 }
  0xf0   : > { %376 = dma.done.wait (!%p258_p2), %s176_s22, 256  }
  0xf1   : > { %378 = vsyncadd (!%p258_p2), %s176_s22, 4294967040  ;;  %p14_p4 = scmp.ge.s32.totalorder %s432_s12, 4   ;;  %s581_s6 = smov %s385_s7 }
  0xf2   : > { %s582_s7 = smov %s389_s8  ;;  %s583_s8 = smov %s444_s15 }
  0xf3   : > { %s584_s9 = smov %s432_s12  ;;  %16 = sbr.rel (!%p14_p4) target bundleno = 5 (0x5), region = 69 }
  0xfa   :  { %181 = vsyncpa [#allocation3], 1 }
  0xfb   :  { %183 = vsyncpa [#allocation3 + $0x1], 1 }
  0xfc   :  { %184 = vsyncpa [#allocation4], 1 }
  0xfd   :  { %186 = vsyncpa [#allocation4 + $0x1], 1 }

</bundles_post_ra>
